<compile_context>
chip_gen: v6e
topology: v6e:2x2x1
jax: 0.10.0
libtpu: 0.0.40
codegen_flags: <defaults>
</compile_context>

<pallas_src>
import jax
import jax.numpy as jnp
from jax.experimental import pallas as pl
from jax.experimental.pallas import tpu as pltpu


def embed_kernel(x_ref, a_ref, b_ref, w1t_ref, w2t_ref, o_ref):
    # x_ref: (C, tn) f32 channel-major slab of one batch
    # a_ref/b_ref: (C, tn) fused BN scale/shift tables
    # w1t_ref: (Cmid, C); w2t_ref: (Cout, Cmid); o_ref: (Cout, tn)
    xn = x_ref[...] * a_ref[...] + b_ref[...]            # fused BN, VPU f32

    w1t = w1t_ref[...]                                    # (Cmid, C), C == 3
    C = xn.shape[0]
    # Layer 1 (C -> Cmid): C broadcast-FMAs on the VPU (K=3 MXU matmul would
    # be pathological).
    h = w1t[:, 0:1] * xn[0:1, :]                          # (Cmid, tn)
    for c in range(1, C):
        h = h + w1t[:, c:c + 1] * xn[c:c + 1, :]
    h = jnp.maximum(h, 0.0)

    # Layer 2 (Cmid -> Cout): full-f32 MXU matmul (MXU has huge slack here;
    # no bf16 casts -> no accuracy loss, no per-step VALU pack work).
    o = jnp.dot(w2t_ref[...], h, preferred_element_type=jnp.float32)
    o_ref[...] = jnp.maximum(o, 0.0).astype(o_ref.dtype)


def _choose_lane_tile(n, bs, c_in, c_mid, c_out, out_bytes,
                      vmem_budget=20 << 20):
    """Largest lane tile that fits the VMEM budget with <=12.5% padding."""
    chosen = 128
    for tn in (8192, 4096, 2048, 1024, 512, 256, 128):
        est = tn * (2 * c_out * out_bytes          # output double-buffer
                    + 2 * c_in * 4                 # x double-buffer
                    + 4 * c_in * 4                 # BN a/b double-buffers
                    + (c_in + c_mid + c_out) * 4)  # f32 intermediates
        if est > vmem_budget:
            continue
        n_pad = pl.cdiv(n, tn) * tn
        if tn == 128 or (n_pad - n) * 8 <= n:      # cap padding waste
            chosen = tn
            break
    # Keep >= 2 grid steps so v7x's 2 TensorCores both get work.
    while bs * pl.cdiv(n, chosen) < 2 and chosen > 128:
        chosen //= 2
    return chosen


def embed_forward(x_nchw, bn_gamma, bn_beta, bn_mean, bn_var, w1, w2,
                  *, eps=1e-5, out_dtype=jnp.float32):
    """x_nchw: (bs, dim, J, T) float32. Returns (bs, dim1, J, T) out_dtype."""
    bs, C, J, T = x_nchw.shape
    Cmid = w1.shape[1]
    Cout = w2.shape[1]
    N = J * T

    # ---- tiny wrapper glue (no full-size transposes / broadcasts) ----
    # BatchNorm1d channel index after view(bs, -1, step) is c*J + j.
    a = bn_gamma / jnp.sqrt(bn_var + eps)                 # (C*J,)
    b = bn_beta - bn_mean * a                             # (C*J,)
    a_exp = jnp.repeat(a.reshape(C, J), T, axis=1)        # (C, J*T), few KiB
    b_exp = jnp.repeat(b.reshape(C, J), T, axis=1)        # (C, J*T)
    w1t = jnp.transpose(w1).astype(jnp.float32)           # (Cmid, C)
    w2t = jnp.transpose(w2).astype(jnp.float32)           # (Cout, Cmid)

    out_bytes = jnp.dtype(out_dtype).itemsize
    tn = _choose_lane_tile(N, bs, C, Cmid, Cout, out_bytes)
    Np = pl.cdiv(N, tn) * tn

    x3 = x_nchw.reshape(bs, C, N)                         # free, keeps NCHW
    if Np != N:                                           # pad -> lane-dense stores
        x3 = jnp.pad(x3, ((0, 0), (0, 0), (0, Np - N)))
        a_exp = jnp.pad(a_exp, ((0, 0), (0, Np - N)))
        b_exp = jnp.pad(b_exp, ((0, 0), (0, Np - N)))

    grid = (Np // tn, bs)                                 # batch innermost:
    # BN tables / weights keep the same block index across the inner axis, so
    # they are DMA'd once per lane tile (not once per (tile, batch)).

    out = pl.pallas_call(
        embed_kernel,
        out_shape=jax.ShapeDtypeStruct((bs, Cout, Np), out_dtype),
        grid_spec=pltpu.PrefetchScalarGridSpec(
            num_scalar_prefetch=0,
            grid=grid,
            in_specs=[
                pl.BlockSpec((None, C, tn), lambda n, i: (i, 0, n)),   # x
                pl.BlockSpec((C, tn), lambda n, i: (0, n)),            # BN a
                pl.BlockSpec((C, tn), lambda n, i: (0, n)),            # BN b
                pl.BlockSpec((Cmid, C), lambda n, i: (0, 0)),          # W1^T
                pl.BlockSpec((Cout, Cmid), lambda n, i: (0, 0)),       # W2^T
            ],
            out_specs=pl.BlockSpec((None, Cout, tn), lambda n, i: (i, 0, n)),
        ),
        compiler_params=pltpu.CompilerParams(
            dimension_semantics=("parallel", "parallel"),
            vmem_limit_bytes=32 << 20),   # fits all gens incl. v7x (64 MiB)
    )(x3, a_exp, b_exp, w1t, w2t)

    if Np != N:
        out = out[:, :, :N]
    return out.reshape(bs, Cout, J, T)                    # free reshape (NCHW)


def reference_forward(x_nchw, bn_gamma, bn_beta, bn_mean, bn_var, w1, w2,
                      eps=1e-5):
    bs, C, J, T = x_nchw.shape
    xf = x_nchw.reshape(bs, C * J, T)
    a = bn_gamma / jnp.sqrt(bn_var + eps)
    b = bn_beta - bn_mean * a
    xn = xf * a[None, :, None] + b[None, :, None]
    xn = xn.reshape(bs, C, J, T)
    h = jnp.einsum("bcjt,cm->bmjt", xn, w1, precision="highest")
    h = jnp.maximum(h, 0.0)
    o = jnp.einsum("bmjt,mn->bnjt", h, w2, precision="highest")
    o = jnp.maximum(o, 0.0)
    return o


if __name__ == "__main__":
    bs, dim, joint_num, step = 2, 3, 8, 16
    dim_mid, dim1 = 64, 128

    key = jax.random.PRNGKey(0)
    kx, kg, kb, km, kv, k1, k2 = jax.random.split(key, 7)

    x = jax.random.normal(kx, (bs, dim, joint_num, step), dtype=jnp.float32)

    # BatchNorm1d(dim * joint_num) parameters / running stats (deterministic)
    bn_gamma = 1.0 + 0.1 * jax.random.normal(kg, (dim * joint_num,), jnp.float32)
    bn_beta = 0.1 * jax.random.normal(kb, (dim * joint_num,), jnp.float32)
    bn_mean = 0.1 * jax.random.normal(km, (dim * joint_num,), jnp.float32)
    bn_var = jnp.abs(1.0 + 0.1 * jax.random.normal(kv, (dim * joint_num,),
                                                   jnp.float32))

    # Conv2d 1x1 weights (bias=False), stored as (C_in, C_out)
    w1 = jax.random.normal(k1, (dim, dim_mid), jnp.float32) * (1.0 / dim ** 0.5)
    w2 = jax.random.normal(k2, (dim_mid, dim1), jnp.float32) * (1.0 / dim_mid ** 0.5)

    ref = reference_forward(x, bn_gamma, bn_beta, bn_mean, bn_var, w1, w2)

    # f32 output path (matches the PyTorch module's dtype semantics).
    out = embed_forward(x, bn_gamma, bn_beta, bn_mean, bn_var, w1, w2)
    out = jax.block_until_ready(out)
    assert out.shape == (bs, dim1, joint_num, step), out.shape
    assert jnp.allclose(out, ref, atol=2e-3, rtol=2e-3), (
        "f32 mismatch vs reference: max abs diff = "
        f"{float(jnp.max(jnp.abs(out - ref)))}")

    # bf16 output path (halves the dominant HBM write traffic; ~2x faster).
    out_bf16 = embed_forward(x, bn_gamma, bn_beta, bn_mean, bn_var, w1, w2,
                             out_dtype=jnp.bfloat16)
    out_bf16 = jax.block_until_ready(out_bf16)
    assert jnp.allclose(out_bf16.astype(jnp.float32), ref,
                        atol=5e-2, rtol=2e-2), (
        "bf16 mismatch vs reference: max abs diff = "
        f"{float(jnp.max(jnp.abs(out_bf16.astype(jnp.float32) - ref)))}")

    print("KERNEL_OK")
</pallas_src>

<mosaic_0001>
module attributes {stable_mosaic.version = 11 : i64} {
  func.func @embed_kernel(%arg0: i32, %arg1: i32, %arg2: memref<1x3x128xf32, #tpu.memory_space<vmem>>, %arg3: memref<3x128xf32, #tpu.memory_space<vmem>>, %arg4: memref<3x128xf32, #tpu.memory_space<vmem>>, %arg5: memref<64x3xf32, #tpu.memory_space<vmem>>, %arg6: memref<128x64xf32, #tpu.memory_space<vmem>>, %arg7: memref<1x128x128xf32, #tpu.memory_space<vmem>>) attributes {dimension_semantics = [#tpu.dimension_semantics<parallel>, #tpu.dimension_semantics<parallel>], iteration_bounds = array<i64: 1, 2>, scalar_prefetch = 0 : i64, scratch_operands = 0 : i64, tpu.core_type = #tpu.core_type<tc>, window_params = [{transform_indices = @transform_0, window_bounds = array<i64: 1, 3, 128>}, {transform_indices = @transform_1, window_bounds = array<i64: 3, 128>}, {transform_indices = @transform_2, window_bounds = array<i64: 3, 128>}, {pipeline_mode = #tpu.pipeline_mode<synchronous>, transform_indices = @transform_3, window_bounds = array<i64: 64, 3>}, {pipeline_mode = #tpu.pipeline_mode<synchronous>, transform_indices = @transform_4, window_bounds = array<i64: 128, 64>}, {transform_indices = @transform_5, window_bounds = array<i64: 1, 128, 128>}]} {
    %c0 = arith.constant 0 : index
    %c0_0 = arith.constant 0 : index
    %c0_1 = arith.constant 0 : index
    %0 = vector.load %arg2[%c0, %c0_0, %c0_1] : memref<1x3x128xf32, #tpu.memory_space<vmem>>, vector<1x3x128xf32>
    %1 = vector.shape_cast %0 : vector<1x3x128xf32> to vector<3x128xf32>
    %c0_2 = arith.constant 0 : index
    %c0_3 = arith.constant 0 : index
    %2 = vector.load %arg3[%c0_2, %c0_3] : memref<3x128xf32, #tpu.memory_space<vmem>>, vector<3x128xf32>
    %3 = arith.mulf %1, %2 : vector<3x128xf32>
    %c0_4 = arith.constant 0 : index
    %c0_5 = arith.constant 0 : index
    %4 = vector.load %arg4[%c0_4, %c0_5] : memref<3x128xf32, #tpu.memory_space<vmem>>, vector<3x128xf32>
    %5 = arith.addf %3, %4 : vector<3x128xf32>
    %c0_6 = arith.constant 0 : index
    %c0_7 = arith.constant 0 : index
    %6 = vector.load %arg5[%c0_6, %c0_7] : memref<64x3xf32, #tpu.memory_space<vmem>>, vector<64x3xf32>
    %7 = vector.extract_strided_slice %6 {offsets = [0, 0], sizes = [64, 1], strides = [1, 1]} : vector<64x3xf32> to vector<64x1xf32>
    %8 = vector.extract_strided_slice %5 {offsets = [0, 0], sizes = [1, 128], strides = [1, 1]} : vector<3x128xf32> to vector<1x128xf32>
    %9 = vector.broadcast %7 : vector<64x1xf32> to vector<64x128xf32>
    %10 = vector.broadcast %8 : vector<1x128xf32> to vector<64x128xf32>
    %11 = arith.mulf %9, %10 : vector<64x128xf32>
    %12 = vector.extract_strided_slice %6 {offsets = [0, 1], sizes = [64, 1], strides = [1, 1]} : vector<64x3xf32> to vector<64x1xf32>
    %13 = vector.extract_strided_slice %5 {offsets = [1, 0], sizes = [1, 128], strides = [1, 1]} : vector<3x128xf32> to vector<1x128xf32>
    %14 = vector.broadcast %12 : vector<64x1xf32> to vector<64x128xf32>
    %15 = vector.broadcast %13 : vector<1x128xf32> to vector<64x128xf32>
    %16 = arith.mulf %14, %15 : vector<64x128xf32>
    %17 = arith.addf %11, %16 : vector<64x128xf32>
    %18 = vector.extract_strided_slice %6 {offsets = [0, 2], sizes = [64, 1], strides = [1, 1]} : vector<64x3xf32> to vector<64x1xf32>
    %19 = vector.extract_strided_slice %5 {offsets = [2, 0], sizes = [1, 128], strides = [1, 1]} : vector<3x128xf32> to vector<1x128xf32>
    %20 = vector.broadcast %18 : vector<64x1xf32> to vector<64x128xf32>
    %21 = vector.broadcast %19 : vector<1x128xf32> to vector<64x128xf32>
    %22 = arith.mulf %20, %21 : vector<64x128xf32>
    %23 = arith.addf %17, %22 : vector<64x128xf32>
    %cst = arith.constant 0.000000e+00 : f32
    %24 = vector.broadcast %cst : f32 to vector<64x128xf32>
    %25 = arith.maximumf %23, %24 : vector<64x128xf32>
    %c0_8 = arith.constant 0 : index
    %c0_9 = arith.constant 0 : index
    %26 = vector.load %arg6[%c0_8, %c0_9] : memref<128x64xf32, #tpu.memory_space<vmem>>, vector<128x64xf32>
    %cst_10 = arith.constant dense<0.000000e+00> : vector<128x128xf32>
    %27 = tpu.matmul %26, %25, %cst_10 {dimension_numbers = #tpu.dot_dimension_numbers<[1], [0], [0], [1], [0, 0, 1, 1], [], []>} : vector<128x64xf32>, vector<64x128xf32>, vector<128x128xf32> -> vector<128x128xf32>
    %cst_11 = arith.constant 0.000000e+00 : f32
    %28 = vector.broadcast %cst_11 : f32 to vector<128x128xf32>
    %29 = arith.maximumf %27, %28 : vector<128x128xf32>
    %c0_12 = arith.constant 0 : index
    %c0_13 = arith.constant 0 : index
    %c0_14 = arith.constant 0 : index
    %30 = vector.load %arg7[%c0_12, %c0_13, %c0_14] : memref<1x128x128xf32, #tpu.memory_space<vmem>>, vector<1x128x128xf32>
    %31 = vector.shape_cast %30 : vector<1x128x128xf32> to vector<128x128xf32>
    %32 = vector.shape_cast %29 : vector<128x128xf32> to vector<1x128x128xf32>
    tpu.vector_store %arg7[%c0_12, %c0_13, %c0_14], %32 {strides = array<i32>} : memref<1x128x128xf32, #tpu.memory_space<vmem>>, vector<1x128x128xf32>,
    return
  }
  func.func @transform_0(%arg0: i32, %arg1: i32) -> (i32, i32, i32) {
    %c0_i32 = arith.constant 0 : i32
    %c0_i32_0 = arith.constant 0 : i32
    return %arg1, %c0_i32, %arg0 : i32, i32, i32
  }
  func.func @transform_1(%arg0: i32, %arg1: i32) -> (i32, i32) {
    %c0_i32 = arith.constant 0 : i32
    %c0_i32_0 = arith.constant 0 : i32
    return %c0_i32, %arg0 : i32, i32
  }
  func.func @transform_2(%arg0: i32, %arg1: i32) -> (i32, i32) {
    %c0_i32 = arith.constant 0 : i32
    %c0_i32_0 = arith.constant 0 : i32
    return %c0_i32, %arg0 : i32, i32
  }
  func.func @transform_3(%arg0: i32, %arg1: i32) -> (i32, i32) {
    %c0_i32 = arith.constant 0 : i32
    %c0_i32_0 = arith.constant 0 : i32
    %c0_i32_1 = arith.constant 0 : i32
    return %c0_i32, %c0_i32_0 : i32, i32
  }
  func.func @transform_4(%arg0: i32, %arg1: i32) -> (i32, i32) {
    %c0_i32 = arith.constant 0 : i32
    %c0_i32_0 = arith.constant 0 : i32
    %c0_i32_1 = arith.constant 0 : i32
    return %c0_i32, %c0_i32_0 : i32, i32
  }
  func.func @transform_5(%arg0: i32, %arg1: i32) -> (i32, i32, i32) {
    %c0_i32 = arith.constant 0 : i32
    %c0_i32_0 = arith.constant 0 : i32
    return %arg1, %c0_i32, %arg0 : i32, i32, i32
  }
}

</mosaic_0001>

<bundles_post_ra>
// kernel: tpu_custom_call.1
= control target key start
LH: loop header
LB: loop body
LE: loop exit
PB: predicated region body
PF: predicated region fallthrough
CT: control target
= control target key end

     0   :  { %10 = vsyncpa [#allocation3], 0  ;;  %s1388_s0 = inlined_call_operand.vmem [shape: f32[2,3,128], index: 0, kind: input, shape index: {}]   ;;  %s1389_s1 = inlined_call_operand.vmem [shape: f32[3,128], index: 1, kind: input, shape index: {}]   ;;  %s1390_s2 = inlined_call_operand.vmem [shape: f32[3,128], index: 2, kind: input, shape index: {}]   ;;  %s1391_s3 = inlined_call_operand.vmem [shape: f32[64,3], index: 3, kind: input, shape index: {}]   ;;  %s1392_s4 = inlined_call_operand.vmem [shape: f32[128,64], index: 4, kind: input, shape index: {}]   ;;  %s1393_s5 = inlined_call_operand.hbm [shape: f32[2,128,128], index: 5, kind: output, shape index: {}]  }
   0x1   :  { %12 = vsyncpa [#allocation3 + $0x1], 0  ;;  %s1121_s18 = smov 0   ;;  %s1123_s19 = smov 0  }
   0x2   :  { %s1125_s20 = smov 0   ;;  %s1127_s21 = smov 0  }
   0x3   :  { %s1129_s22 = smov 0   ;;  %s1131_s23 = smov 0  }
   0x4 LB: > { %s818_s24 = sadd.s32 4294967295, %s1083_s23   ;;  %s819_s25 = sadd.s32 4294967294, %s1083_s23   ;;  %s1083_s23 = sphi %s1131_s23, %s18_s23   ;;  %s1079_s22 = sphi %s1129_s22, %s1400_s22   ;;  %s1075_s21 = sphi %s1127_s21, %s1399_s21   ;;  %s1071_s20 = sphi %s1125_s20, %s1398_s20   ;;  %s1067_s19 = sphi %s1123_s19, %s1397_s19   ;;  %s1063_s18 = sphi %s1121_s18, %s1396_s18  }
   0x5   : > { %s27_s26 = sadd.s32 1, %s1079_s22  ;;  %s161_s27 = sadd.s32 1, %s1071_s20 }
   0x6   : > { %p28_p0 = scmp.ge.s32.totalorder %s27_s26, 2  ;;  %p171_p1 = scmp.ne.s32.totalorder %s1071_s20, %s1067_s19 }
   0x7   : > { %p172_p2 = scmp.eq.s32.totalorder %s818_s24, 1  ;;  %p177_p3 = scmp.ne.s32.totalorder %s1067_s19, %s1063_s18 }
   0x8   : > { %s1402_s26 = smov (%p28_p0, %s27_s26), 0  ;;  %p178_p5 = scmp.eq.s32.totalorder %s819_s25, 1 }
   0x9   : > { %p1161_p4 = por %p172_p2, %p171_p1  ;;  %s156_s29 = ssub.s32 %s1079_s22, %s1402_s26 }
   0xa   : > { %p824_p6 = scmp.ge.s32.totalorder %s1083_s23, 1  ;;  %p159_p7 = scmp.eq.s32.totalorder %s156_s29, 0 }
   0xb   : > { %p1168_p8 = por %p178_p5, %p177_p3  ;;  %p226_p9 = scmp.lt.s32.totalorder %s1083_s23, 3 }
   0xc   : > { %s1174_s6 = scalar_select %p159_p7, %s1071_s20, %s161_s27  }
   0xd   : > { %p227_p10 = pnand %p824_p6, %p226_p9 }
   0xe   : > { %p264_p11 = scmp.lt.s32.totalorder (!%p227_p10), %s1075_s21, 1  ;;  %s261_s25 = sand.u32 (!%p227_p10), 1, %s1067_s19  }
   0xf   : > { %230 = sbr.rel (%p227_p10) target bundleno = 444 (0x1bc), region = 40  ;;  %s825_s27 = sshll.u32 (!%p227_p10), %s261_s25, 7 }
  0x10   : > { %s1314_s29 = scalar_lea.vmem (!%p227_p10), [#allocation2], %s825_s27  ;;  %s848_s7 = sshll.u32 (!%p227_p10), %s1075_s21, 11 }
  0x11   : > { %s713_s8 = sshll.u32 (!%p227_p10), %s1314_s29, 4  ;;  %s1333_s11 = scalar_lea.hbm (!%p227_p10), %s1393_s5, %s848_s7  ;;  %s1335_s8 = int_to_ptr.vmem [resolvable:$true] %s713_s8 }
  0x14   : > { %v290_v0 = vld [vmem:[%s1391_s3 + $0x30] sm:$0xff]  ;;  %v289_v1 = vld [vmem:[%s1391_s3 + $0x28] sm:$0xff]  ;;  %v1085_v2 = vmov 2   ;;  %v1086_v3 = vmov 0   ;;  %v288_v4 = vld [vmem:[%s1391_s3 + $0x20] sm:$0xff]  ;;  %v1087_v5 = vmov 1   ;;  %v332_v17 = vlaneseq }
  0x15   : > { %995 = vset.pattern.permute.xlu0 %v1085_v2  ;;  %989 = vset.pattern.permute.xlu1 %v1086_v3  ;;  %v291_v6 = vld [vmem:[%s1391_s3 + $0x38] sm:$0xff]  ;;  %v286_v7 = vld [vmem:[%s1391_s3 + $0x10] sm:$0xff]  ;;  %v285_v8 = vld [vmem:[%s1391_s3 + $0x8] sm:$0xff]  ;;  %vm472_vm0 = vcmask 523264   ;;  %s265_s12 = scalar_select %p264_p11, %s1075_s21, 1 }
  0x16   : > { %324 = vperm.xlu1 %989, %v290_v0   ;;  %417 = vperm.xlu0 %995, %v289_v1   ;;  %v287_v9 = vld [vmem:[%s1391_s3 + $0x18] sm:$0xff]  ;;  %v284_v10 = vld [vmem:[%s1391_s3] sm:$0xff]  ;;  %v333_v22 = vshrl.u32 %v332_v17, 7  ;;  %s1343_s21 = scalar_lea.sflag [#allocation3], %s261_s25 }
  0x17   : > { %v456_v11 = vld [vmem:[%s1392_s4] sm:$0xff]  ;;  %s826_s13 = sshll.u32 %s265_s12, 2  ;;  %s1007_s12 = scalar_lea.vmem %s1335_s8, 2048 }
  0x18   : > { %v464_v12 = vld [vmem:[%s1392_s4 + $0x40] sm:$0xff]  ;;  %889 = vmatprep.mubr.msk.f32.mxu0 %vm472_vm0, %v456_v11  ;;  %s270_s16 = scalar_lea.vmem %s1388_s0, %s826_s13  ;;  %v378_v25 = vsub.s32 1, %v333_v22  ;;  %v334_v27 = vsub.s32 0, %v333_v22  ;;  %v430_v30 = vsub.s32 2, %v333_v22  ;;  %p1008_p12 = scmp.ne.s32.totalorder %s1335_s8, %s1007_s12 }
  0x19   : > { %901 = vmatprep.mubr.msk.f32.mxu1 %vm472_vm0, %v464_v12  ;;  %v279_v18 = vld [vmem:[%s270_s16] sm:$0x7]  ;;  %s1088_s13 = smov [#allocation2]  }
  0x1a   : > { %990 = vset.pattern.permute.xlu1 %v1087_v5  ;;  %413 = vperm.xlu0 %995, %v288_v4   ;;  %v280_v19 = vld [vmem:[%s1389_s1] sm:$0x7]  ;;  %p1009_p13 = pnand %p1008_p12, %p1161_p4  ;;  %s1011_s14 = sshll.u32 %s1088_s13, 4  ;;  %s1012_s14 = int_to_ptr.vmem [resolvable:$false] %s1011_s14 }
  0x1b   : > { %369 = vperm.xlu1 %990, %v290_v0   ;;  %v281_v23 = vmul.f32 %v280_v19, %v279_v18  ;;  %v282_v24 = vld [vmem:[%s1390_s2] sm:$0x7]  ;;  %s1013_s15 = scalar_lea.vmem %s1012_s14, 4096  ;;  %p1014_p1 = scmp.lt.s32.totalorder %s1335_s8, %s1012_s14 }
  0x1c   : > { %p1010_p0 = pneg %p1009_p13  ;;  %p1015_p2 = scmp.lt.s32.totalorder %s1013_s15, %s1007_s12 }
  0x1d   : > { %v283_v28 = vadd.f32 %v282_v24, %v281_v23 }
  0x1e   : > { %998 = vset.pattern.permute.xlu0 %v1087_v5  ;;  %p1016_p3 = por %p1015_p2, %p1014_p1 }
  0x1f   : > { %991 = vset.pattern.permute.xlu1 %v1085_v2  ;;  %373 = vperm.xlu0 %998, %v291_v6   ;;  %v1221_v31 = vrot.slane %v283_v28, %v378_v25  ;;  %v1225_v33 = vrot.slane %v283_v28, %v334_v27  ;;  %v1227_v35 = vrot.slane %v283_v28, %v430_v30 }
  0x20   : > { %425 = vperm.xlu1 %991, %v291_v6   ;;  %p1017_p5 = pnand %p1016_p3, %p1010_p0 }
  0x23   : > { %353 = vperm.xlu0 %998, %v286_v7  }
  0x24   : > { %992 = vset.pattern.permute.xlu1 %v1087_v5 }
  0x25   : > { %365 = vperm.xlu1 %992, %v289_v1  }
  0x27   : > { %349 = vperm.xlu0 %998, %v285_v8  }
  0x29   : > { %993 = vset.pattern.permute.xlu1 %v1085_v2 }
  0x2a   : > { %421 = vperm.xlu1 %993, %v290_v0  }
  0x2b   : > { %1002 = vset.pattern.permute.xlu0 %v1086_v3 }
  0x2c   : > { %329 = vperm.xlu0 %1002, %v291_v6  }
  0x2e   : > { %994 = vset.pattern.permute.xlu1 %v1087_v5 }
  0x2f   : > { %361 = vperm.xlu1 %994, %v288_v4  }
  0x30   : > { %319 = vperm.xlu0 %1002, %v289_v1  }
  0x33   : > { %996 = vset.pattern.permute.xlu1 %v1086_v3 }
  0x34   : > { %309 = vperm.xlu1 %996, %v287_v9   ;;  %314 = vperm.xlu0 %1002, %v288_v4  }
  0x38   : > { %997 = vset.pattern.permute.xlu1 %v1087_v5  ;;  %294 = vperm.xlu0 %1002, %v284_v10  }
  0x39   : > { %357 = vperm.xlu1 %997, %v287_v9  }
  0x3c   : > { %1006 = vset.pattern.permute.xlu0 %v1085_v2 }
  0x3d   : > { %999 = vset.pattern.permute.xlu1 %v1086_v3  ;;  %397 = vperm.xlu0 %1006, %v284_v10  }
  0x3e   : > { %304 = vperm.xlu1 %999, %v286_v7  }
  0x42   : > { %1000 = vset.pattern.permute.xlu1 %v1085_v2 }
  0x43   : > { %409 = vperm.xlu1 %1000, %v287_v9  }
  0x47   : > { %1001 = vset.pattern.permute.xlu1 %v1086_v3 }
  0x48   : > { %299 = vperm.xlu1 %1001, %v285_v8  }
  0x4c   : > { %1003 = vset.pattern.permute.xlu1 %v1085_v2 }
  0x4d   : > { %405 = vperm.xlu1 %1003, %v286_v7  }
  0x51   : > { %1004 = vset.pattern.permute.xlu1 %v1087_v5 }
  0x52   : > { %345 = vperm.xlu1 %1004, %v284_v10  }
  0x56   : > { %1005 = vset.pattern.permute.xlu1 %v1085_v2 }
  0x57   : > { %401 = vperm.xlu1 %1005, %v285_v8  }
  0x91   : > { %v325_v13 = vpop.permute.xlu1 %324  ;;  %v418_v14 = vpop.permute.xlu0 %417 }
  0x92   : > { %v342_v39 = vmul.f32 %v1225_v33, %v325_v13  ;;  %v437_v46 = vmul.f32 %v1227_v35, %v418_v14 }
  0x95   : > { %v414_v15 = vpop.permute.xlu0 %413 }
  0x96   : > { %v370_v16 = vpop.permute.xlu1 %369  ;;  %v436_v60 = vmul.f32 %v1227_v35, %v414_v15 }
  0x97   : > { %v386_v36 = vmul.f32 %v1221_v31, %v370_v16 }
  0x99   : > { %v394_v42 = vadd.f32 %v386_v36, %v342_v39  ;;  %v467_v39 = vld [vmem:[%s1392_s4 + $0x58] sm:$0xff] }
  0x9a   : > { %v374_v20 = vpop.permute.xlu0 %373 }
  0x9b   : > { %v426_v21 = vpop.permute.xlu1 %425  ;;  %v387_v37 = vmul.f32 %v1221_v31, %v374_v20 }
  0x9c   : > { %v439_v43 = vmul.f32 %v1227_v35, %v426_v21 }
  0x9e   : > { %v1219_v26 = vpop.permute.xlu0 %353 }
  0x9f   : > { %v382_v12 = vmul.f32 %v1221_v31, %v1219_v26 }
  0xa0   : > { %v366_v29 = vpop.permute.xlu1 %365 }
  0xa1   : > { %v385_v48 = vmul.f32 %v1221_v31, %v366_v29 }
  0xa2   : > { %v1223_v32 = vpop.permute.xlu0 %349 }
  0xa3   : > { %v381_v24 = vmul.f32 %v1221_v31, %v1223_v32  ;;  %v458_v32 = vld [vmem:[%s1392_s4 + $0x10] sm:$0xff] }
  0xa5   : > { %v422_v34 = vpop.permute.xlu1 %421 }
  0xa6   : > { %v438_v40 = vmul.f32 %v1227_v35, %v422_v34 }
  0xa7   : > { %v330_v38 = vpop.permute.xlu0 %329 }
  0xa8   : > { %v343_v41 = vmul.f32 %v1225_v33, %v330_v38  ;;  %v446_v49 = vadd.f32 %v438_v40, %v394_v42  ;;  %v459_v38 = vld [vmem:[%s1392_s4 + $0x18] sm:$0xff]  ;;  %v460_v40 = vld [vmem:[%s1392_s4 + $0x20] sm:$0xff]  ;;  %v461_v42 = vld [vmem:[%s1392_s4 + $0x28] sm:$0xff] }
  0xaa   : > { %v395_v44 = vadd.f32 %v387_v37, %v343_v41  ;;  %v362_v45 = vpop.permute.xlu1 %361  ;;  %v454_v56 = vmax.f32 %v446_v49, 0.0  ;;  %v468_v41 = vld [vmem:[%s1392_s4 + $0x60] sm:$0xff] }
  0xab   : > { %v320_v47 = vpop.permute.xlu0 %319  ;;  %v384_v57 = vmul.f32 %v1221_v31, %v362_v45  ;;  %v470_v45 = vld [vmem:[%s1392_s4 + $0x70] sm:$0xff] }
  0xac   : > { %v447_v50 = vadd.f32 %v439_v43, %v395_v44  ;;  %v341_v51 = vmul.f32 %v1225_v33, %v320_v47  ;;  %v469_v43 = vld [vmem:[%s1392_s4 + $0x68] sm:$0xff]  ;;  %v462_v44 = vld [vmem:[%s1392_s4 + $0x30] sm:$0xff]  ;;  %v471_v47 = vld [vmem:[%s1392_s4 + $0x78] sm:$0xff] }
  0xae   : > { %v455_v52 = vmax.f32 %v447_v50, 0.0  ;;  %v393_v53 = vadd.f32 %v385_v48, %v341_v51 }
  0xaf   : > { %v310_v54 = vpop.permute.xlu1 %309  ;;  %v315_v55 = vpop.permute.xlu0 %314 }
  0xb0   : > { %v445_v58 = vadd.f32 %v437_v46, %v393_v53  ;;  %v340_v59 = vmul.f32 %v1225_v33, %v315_v55  ;;  %873 = vmatprep.subr.mxu0 %v455_v52  ;;  %913 = vmatprep.subr.mxu1 %v455_v52  ;;  %v339_v4 = vmul.f32 %v1225_v33, %v310_v54  ;;  %v463_v46 = vld [vmem:[%s1392_s4 + $0x38] sm:$0xff] }
  0xb1   : > { %874 = vmatpush3.msra.mxu0 %v455_v52  ;;  %921 = vmatpush3.msra.mxu1 %v455_v52 }
  0xb2   : > { %v453_v61 = vmax.f32 %v445_v58, 0.0  ;;  %v392_v62 = vadd.f32 %v384_v57, %v340_v59  ;;  %875 = vmatprep.subr.mxu0 %v454_v56  ;;  %914 = vmatprep.subr.mxu1 %v454_v56 }
  0xb3   : > { %876 = vmatpush3.msra.mxu0 %v454_v56  ;;  %922 = vmatpush3.msra.mxu1 %v454_v56  ;;  %v295_v16 = vpop.permute.xlu0 %294 }
  0xb4   : > { %v444_v63 = vadd.f32 %v436_v60, %v392_v62  ;;  %v358_v0 = vpop.permute.xlu1 %357  ;;  %877 = vmatprep.subr.mxu0 %v453_v61  ;;  %915 = vmatprep.subr.mxu1 %v453_v61  ;;  %v336_v22 = vmul.f32 %v1225_v33, %v295_v16 }
  0xb5   : > { %878 = vmatpush3.msra.mxu0 %v453_v61  ;;  %923 = vmatpush3.msra.mxu1 %v453_v61  ;;  %v383_v3 = vmul.f32 %v1221_v31, %v358_v0 }
  0xb6   : > { %v452_v1 = vmax.f32 %v444_v63, 0.0 }
  0xb7   : > { %v391_v6 = vadd.f32 %v383_v3, %v339_v4 }
  0xb8   : > { %879 = vmatprep.subr.mxu0 %v452_v1  ;;  %916 = vmatprep.subr.mxu1 %v452_v1  ;;  %v398_v21 = vpop.permute.xlu0 %397 }
  0xb9   : > { %v305_v2 = vpop.permute.xlu1 %304  ;;  %880 = vmatpush3.msra.mxu0 %v452_v1  ;;  %924 = vmatpush3.msra.mxu1 %v452_v1  ;;  %v432_v26 = vmul.f32 %v1227_v35, %v398_v21 }
  0xba   : > { %v338_v11 = vmul.f32 %v1225_v33, %v305_v2 }
  0xbc   : > { %v390_v14 = vadd.f32 %v382_v12, %v338_v11 }
  0xbe   : > { %v410_v5 = vpop.permute.xlu1 %409 }
  0xbf   : > { %v435_v7 = vmul.f32 %v1227_v35, %v410_v5 }
  0xc1   : > { %v443_v8 = vadd.f32 %v435_v7, %v391_v6 }
  0xc3   : > { %v451_v9 = vmax.f32 %v443_v8, 0.0  ;;  %v300_v10 = vpop.permute.xlu1 %299 }
  0xc4   : > { %v337_v23 = vmul.f32 %v1225_v33, %v300_v10  ;;  %v457_v33 = vld [vmem:[%s1392_s4 + $0x8] sm:$0xff] }
  0xc5   : > { %881 = vmatprep.subr.mxu0 %v451_v9  ;;  %917 = vmatprep.subr.mxu1 %v451_v9 }
  0xc6   : > { %882 = vmatpush3.msra.mxu0 %v451_v9  ;;  %925 = vmatpush3.msra.mxu1 %v451_v9  ;;  %v389_v28 = vadd.f32 %v381_v24, %v337_v23 }
  0xc8   : > { %v406_v13 = vpop.permute.xlu1 %405 }
  0xc9   : > { %v434_v15 = vmul.f32 %v1227_v35, %v406_v13 }
  0xcb   : > { %v442_v17 = vadd.f32 %v434_v15, %v390_v14 }
  0xcd   : > { %v450_v18 = vmax.f32 %v442_v17, 0.0  ;;  %v346_v19 = vpop.permute.xlu1 %345 }
  0xce   : > { %v380_v20 = vmul.f32 %v1221_v31, %v346_v19  ;;  %v465_v31 = vld [vmem:[%s1392_s4 + $0x48] sm:$0xff] }
  0xcf   : > { %883 = vmatprep.subr.mxu0 %v450_v18  ;;  %918 = vmatprep.subr.mxu1 %v450_v18 }
  0xd0   : > { %884 = vmatpush3.msra.mxu0 %v450_v18  ;;  %926 = vmatpush3.msra.mxu1 %v450_v18  ;;  %v388_v25 = vadd.f32 %v380_v20, %v336_v22 }
  0xd2   : > { %v402_v27 = vpop.permute.xlu1 %401  ;;  %v440_v30 = vadd.f32 %v432_v26, %v388_v25 }
  0xd3   : > { %v433_v29 = vmul.f32 %v1227_v35, %v402_v27  ;;  %v466_v35 = vld [vmem:[%s1392_s4 + $0x50] sm:$0xff] }
  0xd4   : > { %v448_v37 = vmax.f32 %v440_v30, 0.0 }
  0xd5   : > { %v441_v34 = vadd.f32 %v433_v29, %v389_v28 }
  0xd7   : > { %v449_v36 = vmax.f32 %v441_v34, 0.0 }
  0xd9   : > { %885 = vmatprep.subr.mxu0 %v449_v36  ;;  %919 = vmatprep.subr.mxu1 %v449_v36 }
  0xda   : > { %886 = vmatpush3.msra.mxu0 %v449_v36  ;;  %927 = vmatpush3.msra.mxu1 %v449_v36 }
  0xdb   : > { %887 = vmatprep.subr.mxu0 %v448_v37  ;;  %920 = vmatprep.subr.mxu1 %v448_v37 }
  0xdc   : > { %888 = vmatpush3.msra.mxu0 %v448_v37  ;;  %928 = vmatpush3.msra.mxu1 %v448_v37 }
  0xdd   : > { %890 = vmatmul.mubr.msk.f32.vlgmr.msra.gmra.mxu0 %vm472_vm0, %v457_v33  ;;  %902 = vmatmul.mubr.msk.f32.vlgmr.msra.gmra.mxu1 %vm472_vm0, %v465_v31 }
  0xde   : > { %892 = vmatprep.mubr.msk.f32.mxu0 %vm472_vm0, %v458_v32  ;;  %904 = vmatprep.mubr.msk.f32.mxu1 %vm472_vm0, %v466_v35 }
  0xe1   : > { %893 = vmatmul.mubr.msk.f32.gmra.mxu0 %vm472_vm0, %v459_v38  ;;  %905 = vmatmul.mubr.msk.f32.gmra.mxu1 %vm472_vm0, %v467_v39 }
  0xe2   : > { %895 = vmatprep.mubr.msk.f32.mxu0 %vm472_vm0, %v460_v40  ;;  %907 = vmatprep.mubr.msk.f32.mxu1 %vm472_vm0, %v468_v41 }
  0xe5   : > { %896 = vmatmul.mubr.msk.f32.gmra.mxu0 %vm472_vm0, %v461_v42  ;;  %908 = vmatmul.mubr.msk.f32.gmra.mxu1 %vm472_vm0, %v469_v43 }
  0xe6   : > { %898 = vmatprep.mubr.msk.f32.mxu0 %vm472_vm0, %v462_v44  ;;  %910 = vmatprep.mubr.msk.f32.mxu1 %vm472_vm0, %v470_v45 }
  0xe9   : > { %899 = vmatmul.mubr.msk.f32.gmra.mxu0 %vm472_vm0, %v463_v46  ;;  %911 = vmatmul.mubr.msk.f32.gmra.mxu1 %vm472_vm0, %v471_v47 }
 0x19d   : > { %v891_v48 = vpop.f32.mrf.mxu0  ;;  %v903_v49 = vpop.f32.mrf.mxu1 }
 0x19e   : > { %v667_v50 = vmax.f32 %v891_v48, 0.0  ;;  %v675_v51 = vmax.f32 %v903_v49, 0.0 }
 0x19f   : > { %v587_v52 = vpop.f32.mrf.mxu0  ;;  %v627_v53 = vpop.f32.mrf.mxu1 }
 0x1a0   : > { %683 = vst [vmem:[%s1314_s29 + $0x8] sm:$0xff] %v667_v50  ;;  %691 = vst [vmem:[%s1314_s29 + $0x48] sm:$0xff] %v675_v51  ;;  %v666_v54 = vmax.f32 %v587_v52, 0.0  ;;  %v674_v55 = vmax.f32 %v627_v53, 0.0 }
 0x1a1   : > { %v894_v56 = vpop.f32.mrf.mxu0  ;;  %v906_v57 = vpop.f32.mrf.mxu1 }
 0x1a2   : > { %682 = vst [vmem:[%s1314_s29] sm:$0xff] %v666_v54  ;;  %690 = vst [vmem:[%s1314_s29 + $0x40] sm:$0xff] %v674_v55  ;;  %v669_v58 = vmax.f32 %v894_v56, 0.0  ;;  %v677_v59 = vmax.f32 %v906_v57, 0.0 }
 0x1a3   : > { %v597_v60 = vpop.f32.mrf.mxu0  ;;  %v637_v61 = vpop.f32.mrf.mxu1 }
 0x1a4   : > { %685 = vst [vmem:[%s1314_s29 + $0x18] sm:$0xff] %v669_v58  ;;  %693 = vst [vmem:[%s1314_s29 + $0x58] sm:$0xff] %v677_v59  ;;  %v668_v62 = vmax.f32 %v597_v60, 0.0  ;;  %v676_v63 = vmax.f32 %v637_v61, 0.0 }
 0x1a5   : > { %v897_v0 = vpop.f32.mrf.mxu0  ;;  %v909_v1 = vpop.f32.mrf.mxu1 }
 0x1a6   : > { %684 = vst [vmem:[%s1314_s29 + $0x10] sm:$0xff] %v668_v62  ;;  %692 = vst [vmem:[%s1314_s29 + $0x50] sm:$0xff] %v676_v63  ;;  %v671_v2 = vmax.f32 %v897_v0, 0.0  ;;  %v679_v3 = vmax.f32 %v909_v1, 0.0 }
 0x1a7   : > { %v607_v4 = vpop.f32.mrf.mxu0  ;;  %v647_v5 = vpop.f32.mrf.mxu1 }
 0x1a8   : > { %687 = vst [vmem:[%s1314_s29 + $0x28] sm:$0xff] %v671_v2  ;;  %695 = vst [vmem:[%s1314_s29 + $0x68] sm:$0xff] %v679_v3  ;;  %v670_v6 = vmax.f32 %v607_v4, 0.0  ;;  %v678_v7 = vmax.f32 %v647_v5, 0.0 }
 0x1a9   : > { %v900_v8 = vpop.f32.mrf.mxu0  ;;  %v912_v9 = vpop.f32.mrf.mxu1 }
 0x1aa   : > { %686 = vst [vmem:[%s1314_s29 + $0x20] sm:$0xff] %v670_v6  ;;  %694 = vst [vmem:[%s1314_s29 + $0x60] sm:$0xff] %v678_v7  ;;  %v673_v10 = vmax.f32 %v900_v8, 0.0  ;;  %v681_v11 = vmax.f32 %v912_v9, 0.0 }
 0x1ab   : > { %v617_v12 = vpop.f32.mrf.mxu0  ;;  %v657_v13 = vpop.f32.mrf.mxu1 }
 0x1ac   : > { %689 = vst [vmem:[%s1314_s29 + $0x38] sm:$0xff] %v673_v10  ;;  %697 = vst [vmem:[%s1314_s29 + $0x78] sm:$0xff] %v681_v11  ;;  %v672_v14 = vmax.f32 %v617_v12, 0.0  ;;  %v680_v15 = vmax.f32 %v657_v13, 0.0 }
 0x1ae   : > { %688 = vst [vmem:[%s1314_s29 + $0x30] sm:$0xff] %v672_v14  ;;  %696 = vst [vmem:[%s1314_s29 + $0x70] sm:$0xff] %v680_v15 }
 0x1af   : > { %1020 = shalt.err (!%p1017_p5)
}
 0x1b0   : > { %s1021_s16 = scalar_lea.hbm %s1333_s11, 2048  ;;  %s1025_s25 = scalar_lea.hbm %s1393_s5, 4096 }
 0x1b1   : > { %p1022_p6 = scmp.ne.s32.totalorder %s1333_s11, %s1021_s16  ;;  %p1026_p10 = scmp.lt.s32.totalorder %s1333_s11, %s1393_s5 }
 0x1b2   : > { %p1027_p11 = scmp.lt.s32.totalorder %s1025_s25, %s1021_s16 }
 0x1b3   : > { %p1023_p7 = pnand %p1022_p6, %p1161_p4 }
 0x1b4   : > { %p1028_p12 = por %p1027_p11, %p1026_p10 }
 0x1b5   : > { %p1024_p9 = pneg %p1023_p7 }
 0x1b7   : > { %p1029_p13 = pnand %p1028_p12, %p1024_p9 }
 0x1b9   : > { %1032 = shalt.err (!%p1029_p13)
}
 0x1ba   : > { %s1089_s7 = smov 128   ;;  %s1090_s9 = smov 8  }
 0x1bb   : > { %929 = dma.vmem_to_hbm [thread:$0]  (%p1161_p4), %s1335_s8, 2048, %s1333_s11, %s1343_s21, %s1089_s7, %s1089_s7, %s1090_s9  }
 0x1bc PF: > { %p935_p0 = scmp.ge.s32.totalorder %s1083_s23, 2  ;;  %s728_s10 = sand.u32 1, %s1063_s18  }
 0x1bd   : > { %s729_s12 = scalar_lea.sflag [#allocation3], %s728_s10 }
 0x1be   : > { %p932_p1 = pnand %p935_p0, %p1168_p8 }
 0x1c0   : > { %p933_p2 = pneg %p932_p1 }
 0x1c2   : > { %1058 = dma.done.wait (%p933_p2), %s729_s12, 2048  }
 0x1c3   : > { %1060 = vsyncadd (%p933_p2), %s729_s12, 4294965248  ;;  %s18_s23 = sadd.s32 1, %s1083_s23   ;;  %s1396_s18 = smov %s1067_s19 }
 0x1c4   : > { %p15_p3 = scmp.ge.s32.totalorder %s18_s23, 4   ;;  %s1397_s19 = smov %s1071_s20 }
 0x1c5   : > { %s1398_s20 = smov %s1174_s6  ;;  %s1399_s21 = smov %s1079_s22 }
 0x1c6   : > { %s1400_s22 = smov %s1402_s26  ;;  %17 = sbr.rel (!%p15_p3) target bundleno = 4 (0x4), region = 81 }
 0x1cb   :  { %734 = vsyncpa [#allocation3], 1 }
 0x1cc   :  { %736 = vsyncpa [#allocation3 + $0x1], 1 }

</bundles_post_ra>
